<compile_context>
chip_gen: v6e
topology: v6e:2x2x1
jax: 0.10.0
libtpu: 0.0.40
codegen_flags: <defaults>
</compile_context>

<pallas_src>
import jax
import jax.numpy as jnp
from jax.experimental import pallas as pl
from jax.experimental.pallas import tpu as pltpu


def _identity_kernel(x_ref, o_ref):
    # Pure pass-through copy of the current VMEM tile.
    o_ref[...] = x_ref[...]


def _min_sublane_rows(dtype) -> int:
    itemsize = jnp.dtype(dtype).itemsize
    if itemsize >= 4:
        return 8
    if itemsize == 2:
        return 16
    return 32


_TARGET_BLOCK_BYTES = 4 * 1024 * 1024  # ~4 MiB blocks: large DMA bursts, VMEM-safe


@jax.jit
def identity(x: jax.Array) -> jax.Array:
    """Pallas implementation of Identity.forward: returns x unchanged."""
    orig_shape = x.shape
    n = x.size
    itemsize = jnp.dtype(x.dtype).itemsize
    min_rows = _min_sublane_rows(x.dtype)

    # Pick the widest lane-dense last dim that divides the element count so the
    # 2D slab needs no padding (reshape of a contiguous array is layout-free).
    lane = 0
    for cand in (4096, 2048, 1024, 512, 256, 128):
        if n % cand == 0:
            lane = cand
            break

    if lane == 0:
        # Ragged total size: one whole-array block (full-extent dims are legal).
        # TODO(synk): tile ragged totals for very large arrays instead of one block.
        x2d = x.reshape(1, n)
        block_rows = 1
        grid = 1
    else:
        rows = n // lane
        block_rows = max(min_rows, _TARGET_BLOCK_BYTES // (lane * itemsize))
        block_rows = (block_rows // min_rows) * min_rows  # keep dtype-native sublane multiple
        if block_rows >= rows:
            block_rows = rows              # full extent is always a legal block dim
        grid = pl.cdiv(rows, block_rows)   # ragged last block is masked by Pallas
        x2d = x.reshape(rows, lane)

    lane_dim = x2d.shape[1]

    out2d = pl.pallas_call(
        _identity_kernel,
        out_shape=jax.ShapeDtypeStruct(x2d.shape, x2d.dtype),
        grid_spec=pltpu.PrefetchScalarGridSpec(
            num_scalar_prefetch=0,
            grid=(grid,),
            in_specs=[pl.BlockSpec((block_rows, lane_dim), lambda i: (i, 0))],
            out_specs=pl.BlockSpec((block_rows, lane_dim), lambda i: (i, 0)),
        ),
        compiler_params=pltpu.CompilerParams(
            dimension_semantics=("parallel",)),
        input_output_aliases={0: 0},
    )(x2d)

    return out2d.reshape(orig_shape)


if __name__ == "__main__":
    key = jax.random.PRNGKey(0)
    x = jax.random.normal(key, (2, 4, 16, 16), dtype=jnp.float32)

    y = identity(x)
    y = jax.block_until_ready(y)

    assert y.shape == x.shape, (y.shape, x.shape)
    assert y.dtype == x.dtype, (y.dtype, x.dtype)
    assert bool(jnp.array_equal(y, x)), "identity output mismatch"

    print("KERNEL_OK")
</pallas_src>

<mosaic_0001>
module attributes {stable_mosaic.version = 11 : i64} {
  func.func @_identity_kernel(%arg0: i32, %arg1: memref<1x2048xf32, #tpu.memory_space<vmem>>, %arg2: memref<1x2048xf32, #tpu.memory_space<vmem>>) attributes {dimension_semantics = [#tpu.dimension_semantics<parallel>], iteration_bounds = array<i64: 1>, scalar_prefetch = 0 : i64, scratch_operands = 0 : i64, tpu.core_type = #tpu.core_type<tc>, window_params = [{transform_indices = @transform_0, window_bounds = array<i64: 1, 2048>}, {transform_indices = @transform_1, window_bounds = array<i64: 1, 2048>}]} {
    %c0 = arith.constant 0 : index
    %c0_0 = arith.constant 0 : index
    %0 = vector.load %arg1[%c0, %c0_0] : memref<1x2048xf32, #tpu.memory_space<vmem>>, vector<1x2048xf32>
    %c0_1 = arith.constant 0 : index
    %c0_2 = arith.constant 0 : index
    %1 = vector.load %arg2[%c0_1, %c0_2] : memref<1x2048xf32, #tpu.memory_space<vmem>>, vector<1x2048xf32>
    tpu.vector_store %arg2[%c0_1, %c0_2], %0 {strides = array<i32>} : memref<1x2048xf32, #tpu.memory_space<vmem>>, vector<1x2048xf32>,
    return
  }
  func.func @transform_0(%arg0: i32) -> (i32, i32) {
    %c0_i32 = arith.constant 0 : i32
    %c0_i32_0 = arith.constant 0 : i32
    return %arg0, %c0_i32 : i32, i32
  }
  func.func @transform_1(%arg0: i32) -> (i32, i32) {
    %c0_i32 = arith.constant 0 : i32
    %c0_i32_0 = arith.constant 0 : i32
    return %arg0, %c0_i32 : i32, i32
  }
}

</mosaic_0001>

<bundles_post_ra>
// kernel: identity.1
= control target key start
LH: loop header
LB: loop body
LE: loop exit
PB: predicated region body
PF: predicated region fallthrough
CT: control target
= control target key end

     0   :  { %s38_s0 = inlined_call_operand.vmem [shape: f32[1,2048], index: 0, kind: input, shape index: {}, may-alias: {0,1}]   ;;  %s39_s1 = inlined_call_operand.vmem [shape: f32[1,2048], index: 1, kind: output, shape index: {}, may-alias: {0,1}]  }
   0x1   :  { %v8_v0 = vld [vmem:[%s38_s0] sm:$0xff]  ;;  %v9_v1 = vld [vmem:[%s38_s0 + $0x8] sm:$0xff] }
   0x2   :  { %10 = vst [vmem:[%s39_s1] sm:$0xff] %v8_v0  ;;  %11 = vst [vmem:[%s39_s1 + $0x8] sm:$0xff] %v9_v1 }

</bundles_post_ra>
